<compile_context>
chip_gen: v7x
topology: tpu7x:2x2x1
jax: 0.10.0
libtpu: 0.0.40
codegen_flags: <defaults>
</compile_context>

<pallas_src>
import jax
import jax.numpy as jnp
from jax.experimental import pallas as pl
from jax.experimental.pallas import tpu as pltpu

B, S, D = 4, 12, 512
N = B * S                       # 48 collapsed rows
DROP_P = 0.1
KEEP_SCALE = 1.0 / (1.0 - DROP_P)
# Compare the low 31 bits of the hash against this (signed int32 compare is
# the most portable predicate): P(bits31 < thresh) ~= DROP_P.
_DROP_THRESH31 = int(round(DROP_P * (2 ** 31)))
_NEG_INF = -1e30


def _dropout_keep_mask(seed_i32):
    """(N, N) bool keep-mask from a counter-based hash (pure jnp ops)."""
    row = jax.lax.broadcasted_iota(jnp.int32, (N, N), 0)
    col = jax.lax.broadcasted_iota(jnp.int32, (N, N), 1)
    idx = (row * N + col).astype(jnp.uint32)
    z = idx + seed_i32.astype(jnp.uint32) * jnp.uint32(0x9E3779B9)
    # lowbias32 avalanche
    z = (z ^ (z >> 16)) * jnp.uint32(0x7FEB352D)
    z = (z ^ (z >> 15)) * jnp.uint32(0x846CA68B)
    z = z ^ (z >> 16)
    bits31 = (z & jnp.uint32(0x7FFFFFFF)).astype(jnp.int32)
    return bits31 >= _DROP_THRESH31


def _attn_kernel(seed_ref, bias_ref, x1_ref, x2_ref, o_ref):
    # scores = (x1 @ x2^T) * 0.125 + block-diagonal bias          -> (48, 48)
    # x2_ref is re-indexed at each use (not bound once at the top) so its
    # vregs are not kept live across the softmax/dropout section.
    scores = jax.lax.dot_general(
        x1_ref[...], x2_ref[...],
        dimension_numbers=(((1,), (1,)), ((), ())),
        preferred_element_type=jnp.float32) * 0.125 + bias_ref[...]

    # Numerically-stable softmax over the last dim.  Cross-batch entries carry
    # a -1e30 bias, so exp() underflows to exactly 0 and they drop out of the
    # row sums.  Exact divide; dropout keep-scale folded into the reciprocal.
    m = jnp.max(scores, axis=-1, keepdims=True)
    e = jnp.exp(scores - m)
    denom = jnp.sum(e, axis=-1, keepdims=True)
    inv = KEEP_SCALE / denom

    # Dropout (training semantics) on the dense (48, 48) tile.
    keep = _dropout_keep_mask(seed_ref[0])
    probs = jnp.where(keep, e * inv, 0.0)

    # output = dropout(softmax(scores)) @ x2       -> (48, 512), lane-dense.
    o_ref[...] = jnp.dot(probs, x2_ref[...],
                         preferred_element_type=jnp.float32).astype(o_ref.dtype)


@jax.jit
def model_forward(x1, x2, seed):
    x1f = x1.reshape(N, D)
    x2f = x2.reshape(N, D)
    # Static block-diagonal additive bias: 0 inside a batch, -1e30 across
    # batches (constant-folded by XLA under jit; passed in, not captured).
    bid = jnp.arange(N, dtype=jnp.int32) // S
    bias = jnp.where(bid[:, None] == bid[None, :],
                     jnp.float32(0.0), jnp.float32(_NEG_INF))

    out = pl.pallas_call(
        _attn_kernel,
        out_shape=jax.ShapeDtypeStruct((N, D), jnp.float32),
        in_specs=[
            pl.BlockSpec(memory_space=pltpu.SMEM),   # seed scalar
            pl.BlockSpec(memory_space=pltpu.VMEM),   # block-diag bias (48,48)
            pl.BlockSpec(memory_space=pltpu.VMEM),   # x1 flat (48,512)
            pl.BlockSpec(memory_space=pltpu.VMEM),   # x2 flat (48,512)
        ],
        out_specs=pl.BlockSpec(memory_space=pltpu.VMEM),
        cost_estimate=pl.CostEstimate(
            flops=4 * N * N * D,            # two (48,48)x(48,512)-class matmuls
            transcendentals=N * N,          # exp
            bytes_accessed=4 * (3 * N * D + N * N)),
    )(seed, bias, x1f, x2f)
    return out.reshape(B, S, D)


def _reference(x1, x2, seed):
    """Pure-JAX reference (PyTorch-style per-batch math, same dropout mask)."""
    qk = jnp.einsum("bqd,bkd->bqk", x1, x2) * 0.125
    p = jax.nn.softmax(qk, axis=-1)
    keep_flat = _dropout_keep_mask(seed[0])
    keep = jnp.stack([keep_flat[b * S:(b + 1) * S, b * S:(b + 1) * S]
                      for b in range(B)])
    p = jnp.where(keep, p * KEEP_SCALE, 0.0)
    return jnp.einsum("bqk,bkd->bqd", p, x2)


if __name__ == "__main__":
    key = jax.random.PRNGKey(0)
    k1, k2 = jax.random.split(key)
    x1 = jax.random.normal(k1, (B, S, D), dtype=jnp.float32)
    x2 = jax.random.normal(k2, (B, S, D), dtype=jnp.float32)
    seed = jnp.array([42], dtype=jnp.int32)

    out = model_forward(x1, x2, seed)
    jax.block_until_ready(out)

    assert out.shape == (B, S, D) and out.dtype == jnp.float32
    assert bool(jnp.all(jnp.isfinite(out)))
    ref = _reference(x1, x2, seed)
    assert bool(jnp.allclose(out, ref, rtol=1e-2, atol=1e-2))
    print("KERNEL_OK")
</pallas_src>

<mosaic_0001>
module attributes {stable_mosaic.version = 11 : i64} {
  func.func @_attn_kernel(%arg0: memref<1xi32, #tpu.memory_space<smem>>, %arg1: memref<48x48xf32, #tpu.memory_space<vmem>>, %arg2: memref<48x512xf32, #tpu.memory_space<vmem>>, %arg3: memref<48x512xf32, #tpu.memory_space<vmem>>, %arg4: memref<48x512xf32, #tpu.memory_space<vmem>>) attributes {dimension_semantics = [], scalar_prefetch = 0 : i64, scratch_operands = 0 : i64, tpu.core_type = #tpu.core_type<tc>} {
    %c0 = arith.constant 0 : index
    %c0_0 = arith.constant 0 : index
    %0 = vector.load %arg2[%c0, %c0_0] : memref<48x512xf32, #tpu.memory_space<vmem>>, vector<48x512xf32>
    %c0_1 = arith.constant 0 : index
    %c0_2 = arith.constant 0 : index
    %1 = vector.load %arg3[%c0_1, %c0_2] : memref<48x512xf32, #tpu.memory_space<vmem>>, vector<48x512xf32>
    %cst = arith.constant dense<0.000000e+00> : vector<48x48xf32>
    %2 = tpu.matmul %0, %1, %cst {dimension_numbers = #tpu.dot_dimension_numbers<[1], [1], [0], [0], [0, 0, 1, 0], [], []>} : vector<48x512xf32>, vector<48x512xf32>, vector<48x48xf32> -> vector<48x48xf32>
    %cst_3 = arith.constant 1.250000e-01 : f32
    %3 = vector.broadcast %cst_3 : f32 to vector<48x48xf32>
    %4 = arith.mulf %2, %3 : vector<48x48xf32>
    %c0_4 = arith.constant 0 : index
    %c0_5 = arith.constant 0 : index
    %5 = vector.load %arg1[%c0_4, %c0_5] : memref<48x48xf32, #tpu.memory_space<vmem>>, vector<48x48xf32>
    %6 = arith.addf %4, %5 : vector<48x48xf32>
    %cst_6 = arith.constant dense<0xFF800000> : vector<48xf32>
    %7 = vector.multi_reduction <maximumf>, %6, %cst_6 [1] : vector<48x48xf32> to vector<48xf32>
    %8 = vector.shape_cast %7 : vector<48xf32> to vector<48x1xf32>
    %9 = vector.broadcast %8 : vector<48x1xf32> to vector<48x48xf32>
    %10 = arith.subf %6, %9 : vector<48x48xf32>
    %11 = math.exp %10 : vector<48x48xf32>
    %cst_7 = arith.constant dense<0.000000e+00> : vector<48xf32>
    %12 = vector.multi_reduction <add>, %11, %cst_7 [1] : vector<48x48xf32> to vector<48xf32>
    %13 = vector.shape_cast %12 : vector<48xf32> to vector<48x1xf32>
    %cst_8 = arith.constant 1.11111116 : f32
    %14 = vector.broadcast %cst_8 : f32 to vector<48x1xf32>
    %15 = arith.divf %14, %13 : vector<48x1xf32>
    %c0_9 = arith.constant 0 : index
    %16 = memref.load %arg0[%c0_9] : memref<1xi32, #tpu.memory_space<smem>>
    %17 = tpu.iota {dimensions = array<i32: 0>} : vector<48x48xi32>
    %18 = tpu.iota {dimensions = array<i32: 1>} : vector<48x48xi32>
    %c48_i32 = arith.constant 48 : i32
    %19 = vector.broadcast %c48_i32 : i32 to vector<48x48xi32>
    %20 = arith.muli %17, %19 : vector<48x48xi32>
    %21 = arith.addi %20, %18 : vector<48x48xi32>
    %c-1640531527_i32 = arith.constant -1640531527 : i32
    %22 = arith.muli %16, %c-1640531527_i32 : i32
    %23 = vector.broadcast %22 : i32 to vector<48x48xi32>
    %24 = arith.addi %21, %23 : vector<48x48xi32>
    %c16_i32 = arith.constant 16 : i32
    %25 = vector.broadcast %c16_i32 : i32 to vector<48x48xi32>
    %26 = arith.shrui %24, %25 : vector<48x48xi32>
    %27 = arith.xori %24, %26 : vector<48x48xi32>
    %c2146121005_i32 = arith.constant 2146121005 : i32
    %28 = vector.broadcast %c2146121005_i32 : i32 to vector<48x48xi32>
    %29 = arith.muli %27, %28 : vector<48x48xi32>
    %c15_i32 = arith.constant 15 : i32
    %30 = vector.broadcast %c15_i32 : i32 to vector<48x48xi32>
    %31 = arith.shrui %29, %30 : vector<48x48xi32>
    %32 = arith.xori %29, %31 : vector<48x48xi32>
    %c-2073254261_i32 = arith.constant -2073254261 : i32
    %33 = vector.broadcast %c-2073254261_i32 : i32 to vector<48x48xi32>
    %34 = arith.muli %32, %33 : vector<48x48xi32>
    %c16_i32_10 = arith.constant 16 : i32
    %35 = vector.broadcast %c16_i32_10 : i32 to vector<48x48xi32>
    %36 = arith.shrui %34, %35 : vector<48x48xi32>
    %37 = arith.xori %34, %36 : vector<48x48xi32>
    %c2147483647_i32 = arith.constant 2147483647 : i32
    %38 = vector.broadcast %c2147483647_i32 : i32 to vector<48x48xi32>
    %39 = arith.andi %37, %38 : vector<48x48xi32>
    %c214748365_i32 = arith.constant 214748365 : i32
    %40 = vector.broadcast %c214748365_i32 : i32 to vector<48x48xi32>
    %41 = arith.cmpi sge, %39, %40 : vector<48x48xi32>
    %42 = vector.broadcast %15 : vector<48x1xf32> to vector<48x48xf32>
    %43 = arith.mulf %11, %42 : vector<48x48xf32>
    %cst_11 = arith.constant 0.000000e+00 : f32
    %44 = vector.broadcast %cst_11 : f32 to vector<48x48xf32>
    %45 = arith.select %41, %43, %44 : vector<48x48xi1>, vector<48x48xf32>
    %c0_12 = arith.constant 0 : index
    %c0_13 = arith.constant 0 : index
    %46 = vector.load %arg3[%c0_12, %c0_13] : memref<48x512xf32, #tpu.memory_space<vmem>>, vector<48x512xf32>
    %cst_14 = arith.constant dense<0.000000e+00> : vector<48x512xf32>
    %47 = tpu.matmul %45, %46, %cst_14 {dimension_numbers = #tpu.dot_dimension_numbers<[1], [0], [0], [1], [0, 0, 1, 1], [], []>} : vector<48x48xf32>, vector<48x512xf32>, vector<48x512xf32> -> vector<48x512xf32>
    %c0_15 = arith.constant 0 : index
    %c0_16 = arith.constant 0 : index
    %48 = vector.load %arg4[%c0_15, %c0_16] : memref<48x512xf32, #tpu.memory_space<vmem>>, vector<48x512xf32>
    tpu.vector_store %arg4[%c0_15, %c0_16], %47 {strides = array<i32>} : memref<48x512xf32, #tpu.memory_space<vmem>>, vector<48x512xf32>,
    return
  }
}

</mosaic_0001>

<bundles_post_ra>
// kernel: model_forward.1
= control target key start
LH: loop header
LB: loop body
LE: loop exit
PB: predicated region body
PF: predicated region fallthrough
CT: control target
= control target key end

     0   :  { %vm274_vm0 = vcmask 392192   ;;  %s1137_s3 = inlined_call_operand.vmem [shape: f32[48,512], index: 3, kind: input, shape index: {}]   ;;  %s1138_s2 = inlined_call_operand.vmem [shape: f32[48,512], index: 2, kind: input, shape index: {}]   ;;  %s1139_s1 = inlined_call_operand.vmem [shape: f32[48,48], index: 1, kind: input, shape index: {}]   ;;  %s1140_s0 = inlined_call_operand.<no memory space> [shape: s32[1], index: 0, kind: input, shape index: {}]   ;;  %s1141_s4 = inlined_call_operand.vmem [shape: f32[48,512], index: 4, kind: output, shape index: {}]  }
   0x1   :  { %v43_v0 = vld [vmem:[%s1137_s3 + $0x8] sm:$0xff]  ;;  %v42_v2 = vld [vmem:[%s1137_s3] sm:$0xff]  ;;  %v45_v18 = vld [vmem:[%s1137_s3 + $0x18] sm:$0xff]  ;;  %s363_s17 = smul.u32 2654435769, %s1140_s0 }
   0x2   :  { %v47_v1 = vld [vmem:[%s1137_s3 + $0x28] sm:$0xff]  ;;  %v46_v4 = vld [vmem:[%s1137_s3 + $0x20] sm:$0xff]  ;;  %v49_v19 = vld [vmem:[%s1137_s3 + $0x38] sm:$0xff] }
   0x3   :  { %v703_v3 = vpack.c.bf16 %v47_v1, %v43_v0  ;;  %v51_v5 = vld [vmem:[%s1137_s3 + $0x48] sm:$0xff]  ;;  %v705_v7 = vpack.c.bf16 %v46_v4, %v42_v2  ;;  %v50_v9 = vld [vmem:[%s1137_s3 + $0x40] sm:$0xff]  ;;  %v715_v21 = vpack.c.bf16 %v49_v19, %v45_v18  ;;  %v44_v22 = vld [vmem:[%s1137_s3 + $0x10] sm:$0xff] }
   0x4   :  { %v55_v6 = vld [vmem:[%s1137_s3 + $0x68] sm:$0xff]  ;;  %v54_v10 = vld [vmem:[%s1137_s3 + $0x60] sm:$0xff]  ;;  %v48_v23 = vld [vmem:[%s1137_s3 + $0x30] sm:$0xff] }
   0x5   :  { %v707_v8 = vpack.c.bf16 %v55_v6, %v51_v5  ;;  %704 = vmatprep.subr.bf16.mxu0 %v703_v3  ;;  %728 = vmatprep.subr.bf16.mxu1 %v703_v3  ;;  %v59_v11 = vld [vmem:[%s1137_s3 + $0x88] sm:$0xff]  ;;  %v709_v14 = vpack.c.bf16 %v54_v10, %v50_v9  ;;  %v58_v16 = vld [vmem:[%s1137_s3 + $0x80] sm:$0xff]  ;;  %v53_v24 = vld [vmem:[%s1137_s3 + $0x58] sm:$0xff]  ;;  %v874_v27 = vpack.c.bf16 %v48_v23, %v44_v22 }
   0x6   :  { %706 = vmatpush1.bf16.xpose.msra.mxu0 %v705_v7  ;;  %v63_v12 = vld [vmem:[%s1137_s3 + $0xa8] sm:$0xff]  ;;  %730 = vmatpush1.bf16.msra.mxu1 %v705_v7  ;;  %v62_v17 = vld [vmem:[%s1137_s3 + $0xa0] sm:$0xff]  ;;  %v57_v25 = vld [vmem:[%s1137_s3 + $0x78] sm:$0xff] }
   0x7   :  { %v19_v13 = vld [vmem:[%s1138_s2 + $0x8] sm:$0xff]  ;;  %708 = vmatprep.subr.bf16.mxu0 %v707_v8  ;;  %732 = vmatprep.subr.bf16.mxu1 %v707_v8  ;;  %v711_v15 = vpack.c.bf16 %v63_v12, %v59_v11  ;;  %v713_v20 = vpack.c.bf16 %v62_v17, %v58_v16  ;;  %v18_v26 = vld [vmem:[%s1138_s2] sm:$0xff]  ;;  %v879_v29 = vpack.c.bf16 %v57_v25, %v53_v24  ;;  %v52_v32 = vld [vmem:[%s1137_s3 + $0x50] sm:$0xff] }
   0x8   :  { %130 = vmatprep.mubr.f32.mxu0 %v19_v13  ;;  %v23_v28 = vld [vmem:[%s1138_s2 + $0x28] sm:$0xff]  ;;  %v22_v30 = vld [vmem:[%s1138_s2 + $0x20] sm:$0xff]  ;;  %v56_v33 = vld [vmem:[%s1137_s3 + $0x70] sm:$0xff] }
   0x9   :  { %v27_v31 = vld [vmem:[%s1138_s2 + $0x48] sm:$0xff]  ;;  %v61_v34 = vld [vmem:[%s1137_s3 + $0x98] sm:$0xff]  ;;  %v26_v36 = vld [vmem:[%s1138_s2 + $0x40] sm:$0xff]  ;;  %v904_v37 = vpack.c.bf16 %v56_v33, %v52_v32 }
   0xa   :  { %734 = vmatpush1.bf16.msra.mxu1 %v709_v14  ;;  %v65_v35 = vld [vmem:[%s1137_s3 + $0xb8] sm:$0xff]  ;;  %v31_v38 = vld [vmem:[%s1138_s2 + $0x68] sm:$0xff]  ;;  %v30_v40 = vld [vmem:[%s1138_s2 + $0x60] sm:$0xff] }
   0xb   :  { %736 = vmatprep.subr.bf16.mxu1 %v711_v15  ;;  %v909_v39 = vpack.c.bf16 %v65_v35, %v61_v34  ;;  %v35_v41 = vld [vmem:[%s1138_s2 + $0x88] sm:$0xff]  ;;  %v60_v42 = vld [vmem:[%s1137_s3 + $0x90] sm:$0xff]  ;;  %v34_v44 = vld [vmem:[%s1138_s2 + $0x80] sm:$0xff] }
   0xc   :  { %v64_v43 = vld [vmem:[%s1137_s3 + $0xb0] sm:$0xff]  ;;  %v39_v46 = vld [vmem:[%s1138_s2 + $0xa8] sm:$0xff]  ;;  %v38_v47 = vld [vmem:[%s1138_s2 + $0xa0] sm:$0xff] }
   0xd   :  { %v928_v45 = vpack.c.bf16 %v64_v43, %v60_v42  ;;  %v21_v48 = vld [vmem:[%s1138_s2 + $0x18] sm:$0xff]  ;;  %v20_v49 = vld [vmem:[%s1138_s2 + $0x10] sm:$0xff]  ;;  %v262_v61 = vld [vmem:[%s1139_s1] sm:$0xff] }
   0xe   :  { %710 = vmatpush1.bf16.xpose.msra.mxu0 %v709_v14  ;;  %738 = vmatpush1.bf16.msra.mxu1 %v713_v20  ;;  %v25_v50 = vld [vmem:[%s1138_s2 + $0x38] sm:$0xff]  ;;  %v24_v51 = vld [vmem:[%s1138_s2 + $0x30] sm:$0xff]  ;;  %v263_v2 = vld [vmem:[%s1139_s1 + $0x8] sm:$0xff] }
   0xf   :  { %712 = vmatprep.subr.bf16.mxu0 %v711_v15  ;;  %740 = vmatprep.subr.bf16.mxu1 %v715_v21  ;;  %v29_v52 = vld [vmem:[%s1138_s2 + $0x58] sm:$0xff]  ;;  %v28_v53 = vld [vmem:[%s1138_s2 + $0x50] sm:$0xff] }
  0x10   :  { %v33_v54 = vld [vmem:[%s1138_s2 + $0x78] sm:$0xff]  ;;  %v32_v55 = vld [vmem:[%s1138_s2 + $0x70] sm:$0xff] }
  0x11   :  { %v37_v56 = vld [vmem:[%s1138_s2 + $0x98] sm:$0xff]  ;;  %v36_v57 = vld [vmem:[%s1138_s2 + $0x90] sm:$0xff] }
  0x12   :  { %v41_v58 = vld [vmem:[%s1138_s2 + $0xb8] sm:$0xff]  ;;  %v40_v59 = vld [vmem:[%s1138_s2 + $0xb0] sm:$0xff] }
  0x13   :  { %v264_v8 = vld [vmem:[%s1139_s1 + $0x10] sm:$0xff]  ;;  %v265_v14 = vld [vmem:[%s1139_s1 + $0x18] sm:$0xff] }
  0x16   :  { %714 = vmatpush1.bf16.xpose.msra.mxu0 %v713_v20  ;;  %v266_v20 = vld [vmem:[%s1139_s1 + $0x20] sm:$0xff] }
  0x17   :  { %716 = vmatprep.subr.bf16.mxu0 %v715_v21 }
  0x1d   :  { %131 = vmatmul.mubr.f32.vlgmr.msra.gmra.mrb[0].mxu0 %v18_v26  ;;  %v267_v26 = vld [vmem:[%s1139_s1 + $0x28] sm:$0xff] }
  0x1e   :  { %718 = vmatpush1.bf16.xpose.msra.mxu0 %v874_v27  ;;  %135 = vmatprep.mubr.f32.mxu0 %v23_v28 }
  0x1f   :  { %720 = vmatprep.subr.bf16.mxu0 %v879_v29 }
  0x21   :  { %136 = vmatmul.mubr.f32.gmra.mrb[2].mxu0 %v22_v30 }
  0x22   :  { %140 = vmatprep.mubr.f32.mxu0 %v27_v31 }
  0x25   :  { %141 = vmatmul.mubr.f32.gmra.mrb[4].mxu0 %v26_v36 }
  0x26   :  { %722 = vmatpush1.bf16.xpose.msra.mxu0 %v904_v37  ;;  %145 = vmatprep.mubr.f32.mxu0 %v31_v38 }
  0x27   :  { %724 = vmatprep.subr.bf16.mxu0 %v909_v39 }
  0x29   :  { %146 = vmatmul.mubr.f32.gmra.mrb[6].mxu0 %v30_v40 }
  0x2a   :  { %150 = vmatprep.mubr.f32.mxu0 %v35_v41 }
  0x2d   :  { %151 = vmatmul.mubr.f32.gmra.mrb[8].mxu0 %v34_v44 }
  0x2e   :  { %726 = vmatpush1.bf16.xpose.msra.mxu0 %v928_v45  ;;  %155 = vmatprep.mubr.f32.mxu0 %v39_v46 }
  0x31   :  { %156 = vmatmul.mubr.f32.gmra.mrb[10].mxu0 %v38_v47 }
  0x32   :  { %225 = vmatprep.mubr.f32.mxu0 %v21_v48 }
  0x35   :  { %226 = vmatmul.mubr.f32.vlgmr.msra.gmra.mrb[0].mxu0 %v20_v49 }
  0x36   :  { %230 = vmatprep.mubr.f32.mxu0 %v25_v50 }
  0x39   :  { %231 = vmatmul.mubr.f32.gmra.mrb[2].mxu0 %v24_v51 }
  0x3a   :  { %235 = vmatprep.mubr.f32.mxu0 %v29_v52 }
  0x3d   :  { %236 = vmatmul.mubr.f32.gmra.mrb[4].mxu0 %v28_v53 }
  0x3e   :  { %240 = vmatprep.mubr.f32.mxu0 %v33_v54 }
  0x41   :  { %241 = vmatmul.mubr.f32.gmra.mrb[6].mxu0 %v32_v55 }
  0x42   :  { %245 = vmatprep.mubr.f32.mxu0 %v37_v56 }
  0x45   :  { %246 = vmatmul.mubr.f32.gmra.mrb[8].mxu0 %v36_v57 }
  0x46   :  { %250 = vmatprep.mubr.f32.mxu0 %v41_v58 }
  0x49   :  { %251 = vmatmul.mubr.f32.gmra.mrb[10].mxu0 %v40_v59 }
 0x108   :  { %v227_v60 = vpop.f32.mrb[0].mxu0 }
 0x109   :  { %v256_v62 = vmul.f32 0.125, %v227_v60  ;;  %v229_v63 = vpop.f32.mrb[1].mxu0 }
 0x10b   :  { %v268_v0 = vadd.f32 %v262_v61, %v256_v62 }
 0x10c   :  { %v232_v1 = vpop.f32.mrb[2].mxu0 }
 0x10d   :  { %v257_v3 = vmul.f32 0.125, %v232_v1  ;;  %v234_v4 = vpop.f32.mrb[3].mxu0  ;;  %v275_v5 = vsel %vm274_vm0, %v268_v0, -inf }
 0x10e   :  { %276 = vmax.xlane.f32.xlu0 %v275_v5  ;;  %v342_v4 = vlaneseq }
 0x10f   :  { %v269_v6 = vadd.f32 %v263_v2, %v257_v3  ;;  %v788_v3 = vmov 0.0  }
 0x110   :  { %v237_v7 = vpop.f32.mrb[4].mxu0  ;;  %525 = vmatprep.mubr.f32.mxu1 %v788_v3  ;;  %v343_v5 = vshrl.u32 %v342_v4, 7 }
 0x111   :  { %v258_v9 = vmul.f32 0.125, %v237_v7  ;;  %v239_v10 = vpop.f32.mrb[5].mxu0  ;;  %v278_v11 = vsel %vm274_vm0, %v269_v6, -inf  ;;  %v350_v7 = vand.u32 127, %v342_v4 }
 0x112   :  { %279 = vmax.xlane.f32.xlu0 %v278_v11  ;;  %v345_v11 = vadd.s32 16, %v343_v5 }
 0x113   :  { %v270_v12 = vadd.f32 %v264_v8, %v258_v9  ;;  %v351_v8 = vmul.u32 48, %v343_v5 }
 0x114   :  { %v242_v13 = vpop.f32.mrb[6].mxu0 }
 0x115   :  { %v259_v15 = vmul.f32 0.125, %v242_v13  ;;  %v244_v16 = vpop.f32.mrb[7].mxu0  ;;  %v281_v17 = vsel %vm274_vm0, %v270_v12, -inf  ;;  %v357_v10 = vadd.s32 %v351_v8, %v350_v7 }
 0x116   :  { %282 = vmax.xlane.f32.xlu1 %v281_v17  ;;  %v346_v16 = vadd.s32 24, %v343_v5 }
 0x117   :  { %v271_v18 = vadd.f32 %v265_v14, %v259_v15  ;;  %v353_v15 = vmul.u32 48, %v345_v11 }
 0x118   :  { %v247_v19 = vpop.f32.mrb[8].mxu0 }
 0x119   :  { %v260_v21 = vmul.f32 0.125, %v247_v19  ;;  %v249_v22 = vpop.f32.mrb[9].mxu0  ;;  %v284_v23 = vsel %vm274_vm0, %v271_v18, -inf  ;;  %v359_v19 = vadd.s32 %v353_v15, %v350_v7 }
 0x11a   :  { %285 = vmax.xlane.f32.xlu1 %v284_v23 }
 0x11b   :  { %v272_v24 = vadd.f32 %v266_v20, %v260_v21  ;;  %v354_v20 = vmul.u32 48, %v346_v16  ;;  %v347_v21 = vadd.s32 32, %v343_v5 }
 0x11c   :  { %v252_v25 = vpop.f32.mrb[10].mxu0 }
 0x11d   :  { %v261_v28 = vmul.f32 0.125, %v252_v25  ;;  %v254_v30 = vpop.f32.mrb[11].mxu0  ;;  %v287_v31 = vsel %vm274_vm0, %v272_v24, -inf  ;;  %v360_v25 = vadd.s32 %v354_v20, %v350_v7 }
 0x11e   :  { %288 = vmax.xlane.f32.xlu0 %v287_v31 }
 0x11f   :  { %v273_v32 = vadd.f32 %v267_v26, %v261_v28  ;;  %v355_v26 = vmul.u32 48, %v347_v21  ;;  %v348_v28 = vadd.s32 40, %v343_v5 }
 0x121   :  { %v290_v33 = vsel %vm274_vm0, %v273_v32, -inf }
 0x122   :  { %291 = vmax.xlane.f32.xlu1 %v290_v33 }
 0x19b   :  { %v277_v34 = vpop.xlane.xlu0 %276 }
 0x19c   :  { %v293_v35 = vsub.f32 %v268_v0, %v277_v34  ;;  %v361_v34 = vadd.s32 %v355_v26, %v350_v7 }
 0x19e   :  { %v299_v36 = vmul.f32 1.442695, %v293_v35  ;;  %v356_v35 = vmul.u32 48, %v348_v28 }
 0x19f   :  { %v280_v38 = vpop.xlane.xlu0 %279 }
 0x1a0   :  { %764 = vpow2.f32 %v299_v36  ;;  %v294_v40 = vsub.f32 %v269_v6, %v280_v38  ;;  %v344_v6 = vadd.s32 8, %v343_v5 }
 0x1a2   :  { %v301_v41 = vmul.f32 1.442695, %v294_v40  ;;  %v352_v9 = vmul.u32 48, %v344_v6 }
 0x1a3   :  { %v283_v42 = vpop.xlane.xlu1 %282 }
 0x1a4   :  { %766 = vpow2.f32 %v301_v41  ;;  %v295_v43 = vsub.f32 %v270_v12, %v283_v42  ;;  %v364_v12 = vstv %s363_s17  ;;  %v358_v13 = vadd.s32 %v352_v9, %v350_v7 }
 0x1a5   :  { %v365_v14 = vadd.s32 %v364_v12, %v357_v10  ;;  %v368_v33 = vadd.s32 %v364_v12, %v360_v25  ;;  %v369_v42 = vadd.s32 %v364_v12, %v361_v34 }
 0x1a6   :  { %v303_v44 = vmul.f32 1.442695, %v295_v43  ;;  %v366_v17 = vadd.s32 %v364_v12, %v358_v13  ;;  %v362_v43 = vadd.s32 %v356_v35, %v350_v7 }
 0x1a7   :  { %v286_v46 = vpop.xlane.xlu1 %285  ;;  %v374_v41 = vshrl.u32 %v368_v33, 16 }
 0x1a8   :  { %768 = vpow2.f32 %v303_v44  ;;  %v296_v47 = vsub.f32 %v271_v18, %v286_v46  ;;  %v371_v18 = vshrl.u32 %v365_v14, 16  ;;  %v372_v22 = vshrl.u32 %v366_v17, 16 }
 0x1aa   :  { %v997_v48 = vpop.eup %764  ;;  %v305_v49 = vmul.f32 1.442695, %v296_v47  ;;  %v377_v23 = vxor.u32 %v371_v18, %v365_v14  ;;  %v378_v30 = vxor.u32 %v372_v22, %v366_v17 }
 0x1ab   :  { %v289_v50 = vpop.xlane.xlu0 %288  ;;  %v311_v51 = vsel %vm274_vm0, %v997_v48, 0.0 }
 0x1ac   :  { %770 = vpow2.f32 %v305_v49  ;;  %v297_v52 = vsub.f32 %v272_v24, %v289_v50  ;;  %312 = vadd.xlane.f32.xlu0 %v311_v51  ;;  %v367_v24 = vadd.s32 %v364_v12, %v359_v19  ;;  %v383_v31 = vmul.u32 2146121005, %v377_v23 }
 0x1ad   :  { %v384_v36 = vmul.u32 2146121005, %v378_v30  ;;  %v380_v49 = vxor.u32 %v374_v41, %v368_v33  ;;  %v375_v50 = vshrl.u32 %v369_v42, 16  ;;  %v370_v51 = vadd.s32 %v364_v12, %v362_v43 }
 0x1ae   :  { %v1001_v53 = vpop.eup %766  ;;  %v307_v54 = vmul.f32 1.442695, %v297_v52  ;;  %v389_v38 = vshrl.u32 %v383_v31, 15 }
 0x1af   :  { %v292_v55 = vpop.xlane.xlu1 %291  ;;  %v314_v56 = vsel %vm274_vm0, %v1001_v53, 0.0  ;;  %v390_v44 = vshrl.u32 %v384_v36, 15 }
 0x1b0   :  { %772 = vpow2.f32 %v307_v54  ;;  %v298_v57 = vsub.f32 %v273_v32, %v292_v55  ;;  %315 = vadd.xlane.f32.xlu1 %v314_v56  ;;  %v373_v32 = vshrl.u32 %v367_v24, 16  ;;  %v395_v46 = vxor.u32 %v389_v38, %v383_v31 }
 0x1b1   :  { %v396_v52 = vxor.u32 %v390_v44, %v384_v36  ;;  %v386_v56 = vmul.u32 2146121005, %v380_v49 }
 0x1b2   :  { %v1005_v58 = vpop.eup %768  ;;  %v309_v59 = vmul.f32 1.442695, %v298_v57  ;;  %v379_v40 = vxor.u32 %v373_v32, %v367_v24  ;;  %v401_v54 = vmul.u32 2221713035, %v395_v46  ;;  %v381_v57 = vxor.u32 %v375_v50, %v369_v42 }
 0x1b3   :  { %v317_v60 = vsel %vm274_vm0, %v1005_v58, 0.0  ;;  %v392_v4 = vshrl.u32 %v386_v56, 15 }
 0x1b4   :  { %774 = vpow2.f32 %v309_v59  ;;  %318 = vadd.xlane.f32.xlu0 %v317_v60  ;;  %v385_v47 = vmul.u32 2146121005, %v379_v40  ;;  %v376_v59 = vshrl.u32 %v370_v51, 16  ;;  %v402_v60 = vmul.u32 2221713035, %v396_v52 }
 0x1b5   :  { %v387_v5 = vmul.u32 2146121005, %v381_v57  ;;  %v398_v11 = vxor.u32 %v392_v4, %v386_v56 }
 0x1b6   :  { %v1009_v61 = vpop.eup %770  ;;  %v391_v55 = vshrl.u32 %v385_v47, 15  ;;  %v382_v6 = vxor.u32 %v376_v59, %v370_v51  ;;  %v408_v7 = vshrl.u32 %v402_v60, 16 }
 0x1b7   :  { %v320_v62 = vsel %vm274_vm0, %v1009_v61, 0.0  ;;  %v393_v12 = vshrl.u32 %v387_v5, 15  ;;  %v404_v18 = vmul.u32 2221713035, %v398_v11 }
 0x1b8   :  { %321 = vadd.xlane.f32.xlu1 %v320_v62  ;;  %v388_v13 = vmul.u32 2146121005, %v382_v6  ;;  %v414_v14 = vxor.u32 %v408_v7, %v402_v60 }
 0x1b9   :  { %v399_v19 = vxor.u32 %v393_v12, %v387_v5  ;;  %v410_v26 = vshrl.u32 %v404_v18, 16 }
 0x1ba   :  { %v1013_v63 = vpop.eup %772  ;;  %v394_v20 = vshrl.u32 %v388_v13, 15  ;;  %v420_v22 = vand.u32 2147483647, %v414_v14 }
 0x1bb   :  { %v323_v0 = vsel %vm274_vm0, %v1013_v63, 0.0  ;;  %v405_v28 = vmul.u32 2221713035, %v399_v19  ;;  %v416_v40 = vxor.u32 %v410_v26, %v404_v18 }
 0x1bc   :  { %324 = vadd.xlane.f32.xlu0 %v323_v0  ;;  %v407_v0 = vshrl.u32 %v401_v54, 16  ;;  %v400_v30 = vxor.u32 %v394_v20, %v388_v13  ;;  %vm1026_vm2 = vcmp.ge.s32.totalorder %v420_v22, 214748365 }
 0x1bd   :  { %v411_v41 = vshrl.u32 %v405_v28, 16  ;;  %v422_v49 = vand.u32 2147483647, %v416_v40 }
 0x1be   :  { %v1017_v1 = vpop.eup %774  ;;  %v413_v9 = vxor.u32 %v407_v0, %v401_v54  ;;  %v406_v42 = vmul.u32 2221713035, %v400_v30 }
 0x1bf   :  { %v326_v2 = vsel %vm274_vm0, %v1017_v1, 0.0  ;;  %v417_v50 = vxor.u32 %v411_v41, %v405_v28  ;;  %vm428_vm4 = vcmp.ge.s32.totalorder %v422_v49, 214748365 }
 0x1c0   :  { %327 = vadd.xlane.f32.xlu1 %v326_v2  ;;  %v397_v2 = vxor.u32 %v391_v55, %v385_v47  ;;  %v419_v16 = vand.u32 2147483647, %v413_v9  ;;  %v412_v51 = vshrl.u32 %v406_v42, 16 }
 0x1c1   :  { %v423_v54 = vand.u32 2147483647, %v417_v50 }
 0x1c2   :  { %v403_v10 = vmul.u32 2221713035, %v397_v2  ;;  %vm425_vm1 = vcmp.ge.s32.totalorder %v419_v16, 214748365  ;;  %v418_v55 = vxor.u32 %v412_v51, %v406_v42 }
 0x1c3   :  { %vm429_vm5 = vcmp.ge.s32.totalorder %v423_v54, 214748365 }
 0x1c4   :  { %v409_v17 = vshrl.u32 %v403_v10, 16 }
 0x1c6   :  { %v415_v25 = vxor.u32 %v409_v17, %v403_v10 }
 0x1c8   :  { %v421_v38 = vand.u32 2147483647, %v415_v25 }
 0x1ca   :  { %vm427_vm3 = vcmp.ge.s32.totalorder %v421_v38, 214748365 }
 0x239   :  { %v313_v62 = vpop.xlane.xlu0 %312 }
 0x23a   :  { %776 = vrcp.f32 %v313_v62 }
 0x23d   :  { %v316_v8 = vpop.xlane.xlu1 %315 }
 0x23e   :  { %778 = vrcp.f32 %v316_v8 }
 0x241   :  { %v319_v15 = vpop.xlane.xlu0 %318 }
 0x242   :  { %780 = vrcp.f32 %v319_v15 }
 0x244   :  { %v777_v21 = vpop.eup %776 }
 0x245   :  { %v330_v23 = vmul.f32 1.1111112, %v777_v21  ;;  %v322_v24 = vpop.xlane.xlu1 %321 }
 0x246   :  { %782 = vrcp.f32 %v322_v24 }
 0x247   :  { %v431_v31 = vmul.f32 %v997_v48, %v330_v23 }
 0x248   :  { %v779_v32 = vpop.eup %778 }
 0x249   :  { %v332_v34 = vmul.f32 1.1111112, %v779_v32  ;;  %v325_v35 = vpop.xlane.xlu0 %324  ;;  %v437_v36 = vsel %vm425_vm1, %v431_v31, 0.0 }
 0x24a   :  { %784 = vrcp.f32 %v325_v35  ;;  %691 = vmatmul.mubr.msk.f32.vlgmr.msra.gmra.mrb[0].mxu1 %vm274_vm0, %v437_v36 }
 0x24b   :  { %v432_v43 = vmul.f32 %v1001_v53, %v332_v34  ;;  %742 = vmatpush1.bf16.msra.mxu1 %v874_v27  ;;  %531 = vmatprep.mubr.f32.mxu1 %v788_v3 }
 0x24c   :  { %v781_v48 = vpop.eup %780  ;;  %744 = vmatprep.subr.bf16.mxu1 %v879_v29 }
 0x24d   :  { %v334_v44 = vmul.f32 1.1111112, %v781_v48  ;;  %v328_v46 = vpop.xlane.xlu1 %327  ;;  %v438_v47 = vsel %vm1026_vm2, %v432_v43, 0.0 }
 0x24e   :  { %786 = vrcp.f32 %v328_v46  ;;  %692 = vmatmul.mubr.msk.f32.gmra.mrb[2].mxu1 %vm274_vm0, %v438_v47 }
 0x24f   :  { %v433_v53 = vmul.f32 %v1005_v58, %v334_v44  ;;  %537 = vmatprep.mubr.f32.mxu1 %v788_v3  ;;  %746 = vmatpush1.bf16.msra.mxu1 %v904_v37  ;;  %v424_v37 = vand.u32 2147483647, %v418_v55 }
 0x250   :  { %v783_v27 = vpop.eup %782  ;;  %748 = vmatprep.subr.bf16.mxu1 %v909_v39 }
 0x251   :  { %v336_v29 = vmul.f32 1.1111112, %v783_v27  ;;  %v439_v52 = vsel %vm427_vm3, %v433_v53, 0.0  ;;  %vm430_vm6 = vcmp.ge.s32.totalorder %v424_v37, 214748365 }
 0x252   :  { %693 = vmatmul.mubr.msk.f32.gmra.mrb[4].mxu1 %vm274_vm0, %v439_v52 }
 0x253   :  { %v434_v56 = vmul.f32 %v1009_v61, %v336_v29  ;;  %543 = vmatprep.mubr.f32.mxu1 %v788_v3  ;;  %750 = vmatpush1.bf16.msra.mxu1 %v928_v45 }
 0x254   :  { %v785_v58 = vpop.eup %784 }
 0x255   :  { %v338_v57 = vmul.f32 1.1111112, %v785_v58  ;;  %v440_v59 = vsel %vm428_vm4, %v434_v56, 0.0 }
 0x256   :  { %694 = vmatmul.mubr.msk.f32.gmra.mrb[6].mxu1 %vm274_vm0, %v440_v59 }
 0x257   :  { %v435_v39 = vmul.f32 %v1013_v63, %v338_v57  ;;  %549 = vmatprep.mubr.f32.mxu1 %v788_v3 }
 0x258   :  { %v787_v60 = vpop.eup %786 }
 0x259   :  { %v340_v62 = vmul.f32 1.1111112, %v787_v60  ;;  %v441_v0 = vsel %vm429_vm5, %v435_v39, 0.0 }
 0x25a   :  { %695 = vmatmul.mubr.msk.f32.gmra.mrb[8].mxu1 %vm274_vm0, %v441_v0 }
 0x25b   :  { %v436_v61 = vmul.f32 %v1017_v1, %v340_v62  ;;  %555 = vmatprep.mubr.f32.mxu1 %v788_v3 }
 0x25d   :  { %v442_v45 = vsel %vm430_vm6, %v436_v61, 0.0 }
 0x25e   :  { %696 = vmatmul.mubr.msk.f32.gmra.mrb[10].mxu1 %vm274_vm0, %v442_v45 }
 0x25f   :  { %626 = vmatprep.mubr.f32.mxu1 %v788_v3 }
 0x262   :  { %697 = vmatmul.mubr.msk.f32.vlgmr.msra.gmra.mrb[12].mxu1 %vm274_vm0, %v437_v36 }
 0x263   :  { %632 = vmatprep.mubr.f32.mxu1 %v788_v3 }
 0x266   :  { %698 = vmatmul.mubr.msk.f32.gmra.mrb[14].mxu1 %vm274_vm0, %v438_v47 }
 0x267   :  { %638 = vmatprep.mubr.f32.mxu1 %v788_v3 }
 0x26a   :  { %699 = vmatmul.mubr.msk.f32.gmra.mrb[16].mxu1 %vm274_vm0, %v439_v52 }
 0x26b   :  { %644 = vmatprep.mubr.f32.mxu1 %v788_v3 }
 0x26e   :  { %700 = vmatmul.mubr.msk.f32.gmra.mrb[18].mxu1 %vm274_vm0, %v440_v59 }
 0x26f   :  { %650 = vmatprep.mubr.f32.mxu1 %v788_v3 }
 0x272   :  { %701 = vmatmul.mubr.msk.f32.gmra.mrb[20].mxu1 %vm274_vm0, %v441_v0 }
 0x273   :  { %656 = vmatprep.mubr.f32.mxu1 %v788_v3 }
 0x276   :  { %702 = vmatmul.mubr.msk.f32.gmra.mrb[22].mxu1 %vm274_vm0, %v442_v45 }
 0x31d   :  { %v527_v63 = vpop.f32.mrb[0].mxu1 }
 0x31e   :  { %663 = vst [vmem:[%s1141_s4] sm:$0xff] %v527_v63  ;;  %v529_v1 = vpop.f32.mrb[1].mxu1 }
 0x31f   :  { %664 = vst [vmem:[%s1141_s4 + $0x8] sm:$0xff] %v529_v1 }
 0x321   :  { %v533_v2 = vpop.f32.mrb[2].mxu1 }
 0x322   :  { %667 = vst [vmem:[%s1141_s4 + $0x20] sm:$0xff] %v533_v2  ;;  %v535_v4 = vpop.f32.mrb[3].mxu1 }
 0x323   :  { %668 = vst [vmem:[%s1141_s4 + $0x28] sm:$0xff] %v535_v4 }
 0x325   :  { %v539_v3 = vpop.f32.mrb[4].mxu1 }
 0x326   :  { %671 = vst [vmem:[%s1141_s4 + $0x40] sm:$0xff] %v539_v3  ;;  %v541_v5 = vpop.f32.mrb[5].mxu1 }
 0x327   :  { %672 = vst [vmem:[%s1141_s4 + $0x48] sm:$0xff] %v541_v5 }
 0x329   :  { %v545_v6 = vpop.f32.mrb[6].mxu1 }
 0x32a   :  { %675 = vst [vmem:[%s1141_s4 + $0x60] sm:$0xff] %v545_v6  ;;  %v547_v7 = vpop.f32.mrb[7].mxu1 }
 0x32b   :  { %676 = vst [vmem:[%s1141_s4 + $0x68] sm:$0xff] %v547_v7 }
 0x32d   :  { %v551_v8 = vpop.f32.mrb[8].mxu1 }
 0x32e   :  { %679 = vst [vmem:[%s1141_s4 + $0x80] sm:$0xff] %v551_v8  ;;  %v553_v9 = vpop.f32.mrb[9].mxu1 }
 0x32f   :  { %680 = vst [vmem:[%s1141_s4 + $0x88] sm:$0xff] %v553_v9 }
 0x331   :  { %v557_v10 = vpop.f32.mrb[10].mxu1 }
 0x332   :  { %683 = vst [vmem:[%s1141_s4 + $0xa0] sm:$0xff] %v557_v10  ;;  %v559_v11 = vpop.f32.mrb[11].mxu1 }
 0x333   :  { %684 = vst [vmem:[%s1141_s4 + $0xa8] sm:$0xff] %v559_v11 }
 0x335   :  { %v628_v12 = vpop.f32.mrb[12].mxu1 }
 0x336   :  { %665 = vst [vmem:[%s1141_s4 + $0x10] sm:$0xff] %v628_v12  ;;  %v630_v13 = vpop.f32.mrb[13].mxu1 }
 0x337   :  { %666 = vst [vmem:[%s1141_s4 + $0x18] sm:$0xff] %v630_v13 }
 0x339   :  { %v634_v14 = vpop.f32.mrb[14].mxu1 }
 0x33a   :  { %669 = vst [vmem:[%s1141_s4 + $0x30] sm:$0xff] %v634_v14  ;;  %v636_v15 = vpop.f32.mrb[15].mxu1 }
 0x33b   :  { %670 = vst [vmem:[%s1141_s4 + $0x38] sm:$0xff] %v636_v15 }
 0x33d   :  { %v640_v16 = vpop.f32.mrb[16].mxu1 }
 0x33e   :  { %673 = vst [vmem:[%s1141_s4 + $0x50] sm:$0xff] %v640_v16  ;;  %v642_v17 = vpop.f32.mrb[17].mxu1 }
 0x33f   :  { %674 = vst [vmem:[%s1141_s4 + $0x58] sm:$0xff] %v642_v17 }
 0x341   :  { %v646_v18 = vpop.f32.mrb[18].mxu1 }
 0x342   :  { %677 = vst [vmem:[%s1141_s4 + $0x70] sm:$0xff] %v646_v18  ;;  %v648_v19 = vpop.f32.mrb[19].mxu1 }
 0x343   :  { %678 = vst [vmem:[%s1141_s4 + $0x78] sm:$0xff] %v648_v19 }
 0x345   :  { %v652_v20 = vpop.f32.mrb[20].mxu1 }
 0x346   :  { %681 = vst [vmem:[%s1141_s4 + $0x90] sm:$0xff] %v652_v20  ;;  %v654_v21 = vpop.f32.mrb[21].mxu1 }
 0x347   :  { %682 = vst [vmem:[%s1141_s4 + $0x98] sm:$0xff] %v654_v21 }
 0x349   :  { %v658_v22 = vpop.f32.mrb[22].mxu1 }
 0x34a   :  { %685 = vst [vmem:[%s1141_s4 + $0xb0] sm:$0xff] %v658_v22  ;;  %v660_v23 = vpop.f32.mrb[23].mxu1 }
 0x34b   :  { %686 = vst [vmem:[%s1141_s4 + $0xb8] sm:$0xff] %v660_v23 }

</bundles_post_ra>
